<compile_context>
chip_gen: v5e
topology: v5e:2x2
jax: 0.10.0
libtpu: 0.0.40
codegen_flags: <defaults>
</compile_context>

<pallas_src>
import functools

import jax
import jax.numpy as jnp
from jax import lax
from jax.experimental import pallas as pl
from jax.experimental.pallas import tpu as pltpu


def _masked_mean_kernel(feat_ref, mask_ref, inv_den_ref, out_ref, acc_ref, *,
                        seq_len):
    """One (tb, ts, th) block of sum_s(features * mask); S is grid axis 2.

      feat_ref   : (tb, ts, th) VMEM      mask_ref : (tb, ts, 1) VMEM f32
      inv_den_ref: (tb, 1) VMEM f32       out_ref  : (tb, th) VMEM
      acc_ref    : (tb, th) f32 scratch
    """
    k = pl.program_id(2)
    ts = feat_ref.shape[1]

    @pl.when(k == 0)
    def _():
        acc_ref[...] = jnp.zeros_like(acc_ref)

    feat = feat_ref[...].astype(jnp.float32)            # (tb, ts, th)
    contrib = feat * mask_ref[...]                      # lane-splat broadcast
    if seq_len % ts != 0:
        # Ragged last S tile: zero the *product*, so unspecified OOB values
        # (possibly NaN) in either operand never reach the accumulator.
        row = k * ts + lax.broadcasted_iota(jnp.int32, (1, ts, 1), 1)
        contrib = jnp.where(row < seq_len, contrib, 0.0)
    acc_ref[...] += jnp.sum(contrib, axis=1)            # sublane reduce -> (tb, th)

    @pl.when(k == pl.num_programs(2) - 1)
    def _():
        out_ref[...] = (acc_ref[...] * inv_den_ref[...]).astype(out_ref.dtype)


def _plain_mean_kernel(feat_ref, out_ref, acc_ref, *, seq_len, inv_seq_len):
    """Mask-free fast path: sum over S, scale by the static 1/S at finalize."""
    k = pl.program_id(2)
    ts = feat_ref.shape[1]

    @pl.when(k == 0)
    def _():
        acc_ref[...] = jnp.zeros_like(acc_ref)

    x = feat_ref[...].astype(jnp.float32)
    if seq_len % ts != 0:
        row = k * ts + lax.broadcasted_iota(jnp.int32, (1, ts, 1), 1)
        x = jnp.where(row < seq_len, x, 0.0)
    acc_ref[...] += jnp.sum(x, axis=1)

    @pl.when(k == pl.num_programs(2) - 1)
    def _():
        # inv_seq_len is a static Python float -> no captured constants.
        out_ref[...] = (acc_ref[...] * inv_seq_len).astype(out_ref.dtype)


def _select_tiles(B, S, H, itemsize, target_block_bytes, max_tb,
                  split_hidden_for_megacore):
    # tb also leads the 2-D output / inv_den blocks -> multiple of 8 or == B.
    tb = B if B <= max_tb else max(8, (max_tb // 8) * 8)

    # th: prefer a single full-H tile (contiguous DMA rows, one mask read).
    if H <= 128 or tb * 8 * H * itemsize <= target_block_bytes:
        th = H
    else:
        th = max(128, min(H // 128,
                          target_block_bytes // (tb * 8 * itemsize) // 128) * 128)

    # v7x megacore: guarantee >=2 parallel grid steps when B fits one tile.
    if (split_hidden_for_megacore and pl.cdiv(B, tb) == 1
            and th == H and H % 256 == 0):
        th = H // 2

    # ts: fill the per-buffer budget (multiple of 8, or the full S).
    max_rows = max(8, target_block_bytes // max(1, tb * th * itemsize))
    ts = S if S <= max_rows else (max_rows // 8) * 8
    return tb, ts, th


def mean_pooling(features, input_mask=None, *,
                 target_block_bytes=16 << 20,   # per feature buffer; fits v5e/v6e/v7x
                 max_tb=8,
                 split_hidden_for_megacore=False):
    """Pallas-backed equivalent of MeanPooling.forward (no input padding)."""
    B, S, H = features.shape
    out_dtype = features.dtype
    itemsize = jnp.dtype(out_dtype).itemsize

    tb, ts, th = _select_tiles(B, S, H, itemsize, target_block_bytes, max_tb,
                               split_hidden_for_megacore)
    grid = (pl.cdiv(B, tb), pl.cdiv(H, th), pl.cdiv(S, ts))

    feat_spec = pl.BlockSpec((tb, ts, th), lambda i, j, k: (i, k, j))
    out_spec = pl.BlockSpec((tb, th), lambda i, j, k: (i, j))
    out_shape = jax.ShapeDtypeStruct((B, H), out_dtype)

    feat_blk = tb * ts * th * itemsize
    out_blk = tb * th * itemsize
    acc_blk = tb * th * 4

    def _compiler_params(extra_input_block_bytes):
        vmem = 2 * (feat_blk + extra_input_block_bytes + out_blk) + acc_blk
        vmem = min(56 << 20, max(16 << 20, vmem + (4 << 20)))   # <= v7x budget
        return pltpu.CompilerParams(
            dimension_semantics=("parallel", "parallel", "arbitrary"),
            vmem_limit_bytes=int(vmem),
        )

    if input_mask is None:
        kernel = functools.partial(_plain_mean_kernel, seq_len=S,
                                   inv_seq_len=1.0 / S)
        cost = pl.CostEstimate(
            flops=B * S * H,
            transcendentals=0,
            bytes_accessed=B * S * H * itemsize + B * H * itemsize)
        return pl.pallas_call(
            kernel,
            out_shape=out_shape,
            grid_spec=pltpu.PrefetchScalarGridSpec(
                num_scalar_prefetch=0,
                grid=grid,
                in_specs=[feat_spec],
                out_specs=out_spec,
                scratch_shapes=[pltpu.VMEM((tb, th), jnp.float32)],
            ),
            compiler_params=_compiler_params(0),
            cost_estimate=cost,
        )(features)

    # ---------------- masked path ----------------
    mask = input_mask.astype(jnp.float32)                   # (B, S)
    # Denominator once per row (tiny [B,S] reduce in the wrapper). No clamp,
    # for parity with the PyTorch reference (fully-masked rows -> inf/nan).
    inv_den = 1.0 / jnp.sum(mask, axis=1, keepdims=True)    # (B, 1) f32
    mask3 = mask.reshape(B, S, 1)                           # keep S on sublanes

    mask_spec = pl.BlockSpec((tb, ts, 1), lambda i, j, k: (i, k, 0))
    den_spec = pl.BlockSpec((tb, 1), lambda i, j, k: (i, 0))

    cost = pl.CostEstimate(
        flops=2 * B * S * H,
        transcendentals=0,
        bytes_accessed=(B * S * H * itemsize + (B * S + B) * 4
                        + B * H * itemsize))

    kernel = functools.partial(_masked_mean_kernel, seq_len=S)
    return pl.pallas_call(
        kernel,
        out_shape=out_shape,
        grid_spec=pltpu.PrefetchScalarGridSpec(
            num_scalar_prefetch=0,
            grid=grid,
            in_specs=[feat_spec, mask_spec, den_spec],
            out_specs=out_spec,
            scratch_shapes=[pltpu.VMEM((tb, th), jnp.float32)],
        ),
        compiler_params=_compiler_params(tb * ts * 4 + tb * 4),
        cost_estimate=cost,
    )(features, mask3, inv_den)


def _reference(features, input_mask=None):
    if input_mask is not None:
        masked = features * input_mask[:, :, None]
        return jnp.sum(masked, axis=1) / jnp.sum(input_mask, axis=1, keepdims=True)
    return jnp.mean(features, axis=1)


if __name__ == "__main__":
    key = jax.random.PRNGKey(0)
    k1, k2, k3, k4 = jax.random.split(key, 4)

    # 1) Small shape matching the module's typical sentence-pooling use
    #    (single-block grid, full-H tile, full-S tile).
    B, S, H = 2, 8, 32
    feats = jax.random.normal(k1, (B, S, H), dtype=jnp.float32)
    mask = (jax.random.uniform(k2, (B, S)) > 0.4).astype(jnp.float32)
    mask = mask.at[:, 0].set(1.0)                 # >= 1 valid token per row

    out = jax.block_until_ready(mean_pooling(feats, mask))
    ref = _reference(feats, mask)
    assert out.shape == (B, H)
    assert jnp.allclose(out, ref, atol=1e-5, rtol=1e-5), "masked small mismatch"

    out_p = jax.block_until_ready(mean_pooling(feats, None))
    assert jnp.allclose(out_p, _reference(feats, None), atol=1e-5, rtol=1e-5), \
        "plain small mismatch"

    # 2) Multi-tile grid without any wrapper padding: ragged B (9 rows over
    #    tb=8), ragged S (50 % 8 != 0 -> in-kernel iota masking), split H
    #    (256 -> two 128-lane tiles), 7 S accumulation steps.
    #    target_block_bytes is shrunk only to force tiny tiles at test scale.
    B2, S2, H2 = 9, 50, 256
    feats2 = jax.random.normal(k3, (B2, S2, H2), dtype=jnp.float32)
    mask2 = (jax.random.uniform(k4, (B2, S2)) > 0.5).astype(jnp.float32)
    mask2 = mask2.at[:, 0].set(1.0)

    out2 = jax.block_until_ready(
        mean_pooling(feats2, mask2, target_block_bytes=32 * 1024))
    ref2 = _reference(feats2, mask2)
    assert out2.shape == (B2, H2)
    assert jnp.allclose(out2, ref2, atol=1e-4, rtol=1e-4), "masked ragged mismatch"

    out2p = jax.block_until_ready(
        mean_pooling(feats2, None, target_block_bytes=32 * 1024))
    assert jnp.allclose(out2p, _reference(feats2, None), atol=1e-4, rtol=1e-4), \
        "plain ragged mismatch"

    # 3) v7x megacore option: single B tile -> H split into 2 parallel tiles.
    B3, S3, H3 = 2, 16, 512
    feats3 = jax.random.normal(k1, (B3, S3, H3), dtype=jnp.float32)
    mask3 = (jax.random.uniform(k2, (B3, S3)) > 0.3).astype(jnp.float32)
    mask3 = mask3.at[:, 0].set(1.0)
    out3 = jax.block_until_ready(
        mean_pooling(feats3, mask3, split_hidden_for_megacore=True))
    assert jnp.allclose(out3, _reference(feats3, mask3), atol=1e-5, rtol=1e-5), \
        "megacore-split mismatch"

    print("KERNEL_OK")
</pallas_src>

<mosaic_0001>
module attributes {stable_mosaic.version = 11 : i64} {
  func.func @_masked_mean_kernel(%arg0: i32, %arg1: i32, %arg2: i32, %arg3: memref<2x8x32xf32, #tpu.memory_space<vmem>>, %arg4: memref<2x8x1xf32, #tpu.memory_space<vmem>>, %arg5: memref<2x1xf32, #tpu.memory_space<vmem>>, %arg6: memref<2x32xf32, #tpu.memory_space<vmem>>, %arg7: memref<2x32xf32, #tpu.memory_space<vmem>>) attributes {dimension_semantics = [#tpu.dimension_semantics<parallel>, #tpu.dimension_semantics<parallel>, #tpu.dimension_semantics<arbitrary>], iteration_bounds = array<i64: 1, 1, 1>, scalar_prefetch = 0 : i64, scratch_operands = 1 : i64, tpu.core_type = #tpu.core_type<tc>, window_params = [{transform_indices = @transform_0, window_bounds = array<i64: 2, 8, 32>}, {transform_indices = @transform_1, window_bounds = array<i64: 2, 8, 1>}, {transform_indices = @transform_2, window_bounds = array<i64: 2, 1>}, {transform_indices = @transform_3, window_bounds = array<i64: 2, 32>}]} {
    %c0_i32 = arith.constant 0 : i32
    %0 = arith.cmpi eq, %arg2, %c0_i32 : i32
    %1 = arith.extui %0 : i1 to i32
    %c0_i32_0 = arith.constant 0 : i32
    %2 = arith.cmpi ne, %1, %c0_i32_0 : i32
    scf.if %2 {
      %cst_12 = arith.constant 0.000000e+00 : f32
      %14 = vector.broadcast %cst_12 : f32 to vector<2x32xf32>
      %c0_13 = arith.constant 0 : index
      %c0_14 = arith.constant 0 : index
      %15 = vector.load %arg7[%c0_13, %c0_14] : memref<2x32xf32, #tpu.memory_space<vmem>>, vector<2x32xf32>
      tpu.vector_store %arg7[%c0_13, %c0_14], %14 {strides = array<i32>} : memref<2x32xf32, #tpu.memory_space<vmem>>, vector<2x32xf32>,
    } else {
    }
    %c0 = arith.constant 0 : index
    %c0_1 = arith.constant 0 : index
    %c0_2 = arith.constant 0 : index
    %3 = vector.load %arg3[%c0, %c0_1, %c0_2] : memref<2x8x32xf32, #tpu.memory_space<vmem>>, vector<2x8x32xf32>
    %c0_3 = arith.constant 0 : index
    %c0_4 = arith.constant 0 : index
    %c0_5 = arith.constant 0 : index
    %4 = vector.load %arg4[%c0_3, %c0_4, %c0_5] : memref<2x8x1xf32, #tpu.memory_space<vmem>>, vector<2x8x1xf32>
    %5 = vector.broadcast %4 : vector<2x8x1xf32> to vector<2x8x32xf32>
    %6 = arith.mulf %3, %5 : vector<2x8x32xf32>
    %c0_6 = arith.constant 0 : index
    %c0_7 = arith.constant 0 : index
    %7 = vector.load %arg7[%c0_6, %c0_7] : memref<2x32xf32, #tpu.memory_space<vmem>>, vector<2x32xf32>
    %cst = arith.constant dense<0.000000e+00> : vector<2x32xf32>
    %8 = vector.multi_reduction <add>, %6, %cst [1] : vector<2x8x32xf32> to vector<2x32xf32>
    %9 = arith.addf %7, %8 : vector<2x32xf32>
    %c0_8 = arith.constant 0 : index
    %c0_9 = arith.constant 0 : index
    %10 = vector.load %arg7[%c0_8, %c0_9] : memref<2x32xf32, #tpu.memory_space<vmem>>, vector<2x32xf32>
    tpu.vector_store %arg7[%c0_8, %c0_9], %9 {strides = array<i32>} : memref<2x32xf32, #tpu.memory_space<vmem>>, vector<2x32xf32>,
    %c0_i32_10 = arith.constant 0 : i32
    %11 = arith.cmpi eq, %arg2, %c0_i32_10 : i32
    %12 = arith.extui %11 : i1 to i32
    %c0_i32_11 = arith.constant 0 : i32
    %13 = arith.cmpi ne, %12, %c0_i32_11 : i32
    scf.if %13 {
      %c0_12 = arith.constant 0 : index
      %c0_13 = arith.constant 0 : index
      %14 = vector.load %arg7[%c0_12, %c0_13] : memref<2x32xf32, #tpu.memory_space<vmem>>, vector<2x32xf32>
      %c0_14 = arith.constant 0 : index
      %c0_15 = arith.constant 0 : index
      %15 = vector.load %arg5[%c0_14, %c0_15] : memref<2x1xf32, #tpu.memory_space<vmem>>, vector<2x1xf32>
      %16 = vector.broadcast %15 : vector<2x1xf32> to vector<2x32xf32>
      %17 = arith.mulf %14, %16 : vector<2x32xf32>
      %c0_16 = arith.constant 0 : index
      %c0_17 = arith.constant 0 : index
      %18 = vector.load %arg6[%c0_16, %c0_17] : memref<2x32xf32, #tpu.memory_space<vmem>>, vector<2x32xf32>
      tpu.vector_store %arg6[%c0_16, %c0_17], %17 {strides = array<i32>} : memref<2x32xf32, #tpu.memory_space<vmem>>, vector<2x32xf32>,
    } else {
    }
    return
  }
  func.func @transform_0(%arg0: i32, %arg1: i32, %arg2: i32) -> (i32, i32, i32) {
    %c0_i32 = arith.constant 0 : i32
    return %arg0, %arg2, %arg1 : i32, i32, i32
  }
  func.func @transform_1(%arg0: i32, %arg1: i32, %arg2: i32) -> (i32, i32, i32) {
    %c0_i32 = arith.constant 0 : i32
    %c0_i32_0 = arith.constant 0 : i32
    return %arg0, %arg2, %c0_i32 : i32, i32, i32
  }
  func.func @transform_2(%arg0: i32, %arg1: i32, %arg2: i32) -> (i32, i32) {
    %c0_i32 = arith.constant 0 : i32
    %c0_i32_0 = arith.constant 0 : i32
    return %arg0, %c0_i32 : i32, i32
  }
  func.func @transform_3(%arg0: i32, %arg1: i32, %arg2: i32) -> (i32, i32) {
    %c0_i32 = arith.constant 0 : i32
    return %arg0, %arg1 : i32, i32
  }
}

</mosaic_0001>

<bundles_post_ra>
// kernel: tpu_custom_call.1
= control target key start
LH: loop header
LB: loop body
LE: loop exit
PB: predicated region body
PF: predicated region fallthrough
CT: control target
= control target key end

     0   :  { %v120_v2 = vmov 0   ;;  %s164_s0 = inlined_call_operand.vmem [shape: f32[2,8,32], index: 0, kind: input, shape index: {}]   ;;  %s165_s1 = inlined_call_operand.vmem [shape: f32[2,8,1], index: 1, kind: input, shape index: {}]   ;;  %s166_s2 = inlined_call_operand.vmem [shape: f32[2,1], index: 2, kind: input, shape index: {}]   ;;  %s167_s3 = inlined_call_operand.hbm [shape: f32[2,32], index: 3, kind: output, shape index: {}]  }
   0x1   :  { %v23_v0 = vld [vmem:[%s165_s1] sm:$0xff]  ;;  %92 = vset.pattern.permute.xlu0 %v120_v2  ;;  %93 = vset.pattern.permute.xlu1 %v120_v2 }
   0x2   :  { %v65_v1 = vld [vmem:[%s166_s2] sm:$0x3] }
   0x3   :  { %8 = vsyncpa [#allocation4], 0  ;;  %27 = vperm.xlu0 %92, %v23_v0   ;;  %68 = vperm.xlu1 %93, %v65_v1   ;;  %v24_v3 = vld [vmem:[%s165_s1 + $0x8] sm:$0xff]  ;;  %vm19_vm0 = vcmask 254976   ;;  %v121_v4 = vmov 0.0   ;;  %v21_v5 = vld [vmem:[%s164_s0] sm:$0xff] }
   0x4   :  { %20 = vst.msk [vmem:[#allocation2] sm:$0x3] %vm19_vm0, %v121_v4  ;;  %vm38_vm1 = vcmask 261120   ;;  %v22_v11 = vld [vmem:[%s164_s0 + $0x8] sm:$0xff]  ;;  %vm55_vm2 = vcmask 1041409   ;;  %s122_s0 = smov [#allocation3]  }
   0x5   :  { %s78_s1 = sshll.u32 %s122_s0, 4  ;;  %s80_s23 = sshll.u32 %s167_s3, 4  ;;  %s79_s1 = int_to_ptr.vmem [resolvable:$true] %s78_s1  ;;  %s81_s23 = int_to_ptr.hbm [resolvable:$true] %s80_s23 }
   0xb   :  { %32 = vperm.xlu0 %92, %v24_v3   ;;  %v37_v25 = vld [vmem:[#allocation2] sm:$0x3] }
  0x75   :  { %v28_v6 = vpop.permute.xlu0 %27  ;;  %v69_v28 = vpop.permute.xlu1 %68 }
  0x76   :  { %v35_v7 = vmul.f32 %v28_v6, %v21_v5 }
  0x78   :  { %v39_v8 = vsel %vm38_vm1, %v35_v7, 0.0 }
  0x79   :  { %v40_v9 = vrot.slane %v39_v8, 4 }
  0x7b   :  { %v41_v10 = vadd.f32 %v40_v9, %v39_v8 }
  0x7d   :  { %v33_v12 = vpop.permute.xlu0 %32  ;;  %v42_v14 = vrot.slane %v41_v10, 2 }
  0x7e   :  { %v36_v13 = vmul.f32 %v33_v12, %v22_v11 }
  0x7f   :  { %v43_v17 = vadd.f32 %v42_v14, %v41_v10 }
  0x80   :  { %v46_v15 = vsel %vm38_vm1, %v36_v13, 0.0 }
  0x81   :  { %v47_v16 = vrot.slane %v46_v15, 4  ;;  %v44_v20 = vrot.slane %v43_v17, 1 }
  0x83   :  { %v48_v18 = vadd.f32 %v47_v16, %v46_v15  ;;  %v45_v23 = vadd.f32 %v44_v20, %v43_v17 }
  0x85   :  { %v49_v19 = vrot.slane %v48_v18, 2 }
  0x87   :  { %v50_v21 = vadd.f32 %v49_v19, %v48_v18 }
  0x89   :  { %v51_v22 = vrot.slane %v50_v21, 1 }
  0x8b   :  { %v52_v24 = vadd.f32 %v51_v22, %v50_v21 }
  0x8d   :  { %v56_v26 = vsel %vm55_vm2, %v52_v24, %v45_v23 }
  0x8e   :  { %v58_v27 = vadd.f32 %v56_v26, %v37_v25 }
  0x90   :  { %60 = vst.msk [vmem:[#allocation2] sm:$0x3] %vm19_vm0, %v58_v27 }
  0x97   :  { %v64_v29 = vld [vmem:[#allocation2] sm:$0x3] }
  0x98   :  { %v71_v30 = vmul.f32 %v69_v28, %v64_v29 }
  0x9a   :  { %72 = vst.msk [vmem:[#allocation3] sm:$0x3] %vm19_vm0, %v71_v30 }
  0x9b   :  { %83 = dma.vmem_to_hbm [thread:$0]  %s79_s1, 32, %s81_s23, [#allocation4]  }
  0x9c   :  { %118 = dma.done.wait [#allocation4], 32  }
  0x9d   :  { %119 = vsyncadd [#allocation4], 4294967264 }
  0x9e   :  { %88 = vsyncpa [#allocation4], 1 }

</bundles_post_ra>
